<compile_context>
chip_gen: v5e
topology: v5e:2x2
jax: 0.10.0
libtpu: 0.0.40
codegen_flags: <defaults>
</compile_context>

<pallas_src>
import jax
import jax.numpy as jnp
from jax.experimental import pallas as pl
from jax.experimental.pallas import tpu as pltpu

LANE = 128            # lane-dense padded width for every matmul operand / output
SUBLANE_BF16 = 16     # bf16 packed vreg tile is (16, 128)
DEFAULT_ROWS = 512    # row-block size; sweep {256, 512, 1024} on real shapes


def _round_up(x, m):
    return ((x + m - 1) // m) * m


def choose_rows(n, max_rows=DEFAULT_ROWS):
    """Row-block size: multiple of 16 (bf16 sublane packing), capped at max_rows."""
    return min(max_rows, _round_up(max(n, SUBLANE_BF16), SUBLANE_BF16))


# ----------------------------- Pallas kernel --------------------------------
def fused_forward_kernel(x_ref, valid_ref, wenc_ref, benc_ref,
                         w1_ref, b1_ref, w2_ref, b2_ref, out_ref):
    f32 = jnp.float32

    # UnimodalEncoder (a|t|v fused as one block-diagonal matmul): Linear + ReLU.
    h = jnp.maximum(
        jnp.dot(x_ref[...], wenc_ref[...], preferred_element_type=f32)
        + benc_ref[...], 0.0)                               # (ROWS, 128), cols 3H: = 0

    # Classifier (corect): Linear + ReLU + Linear.
    z = jnp.maximum(
        jnp.dot(h.astype(w1_ref.dtype), w1_ref[...], preferred_element_type=f32)
        + b1_ref[...], 0.0)
    logits = (jnp.dot(z.astype(w2_ref.dtype), w2_ref[...], preferred_element_type=f32)
              + b2_ref[...])                                # padded cols biased -1e30

    # log_softmax in f32 over the full 128-lane axis (padded cols vanish from sum).
    m = jnp.max(logits, axis=-1, keepdims=True)
    lse = jnp.log(jnp.sum(jnp.exp(logits - m), axis=-1, keepdims=True)) + m
    logp = logits - lse

    # Mask padded utterance rows (text_len_tensor) via the per-row valid flag.
    valid = valid_ref[...] > 0                              # (ROWS, 1) bool
    out_ref[...] = jnp.where(valid, logp, 0.0).astype(out_ref.dtype)


# --------------------------- one-time weight packing --------------------------
def pack_params(params, lane=LANE):
    """Fuse the 3 encoder Linears into one block-diagonal matmul; pad to 128 lanes.
    Call ONCE (hoisted out of the per-forward path) and reuse the result."""
    f32, bf16 = jnp.float32, jnp.bfloat16
    da, dt, dv = params["wa"].shape[0], params["wt"].shape[0], params["wv"].shape[0]
    H = params["wa"].shape[1]
    tag = params["w2"].shape[1]
    ic = 3 * H                                              # ic_dim
    d_tot = da + dt + dv
    assert d_tot <= lane and ic <= lane and H <= lane and tag <= lane

    # block-diagonal encoder weight (order a,t,v matches GraphModel's concat)
    wenc = jnp.zeros((lane, lane), f32)
    wenc = wenc.at[:da, 0:H].set(params["wa"])
    wenc = wenc.at[da:da + dt, H:2 * H].set(params["wt"])
    wenc = wenc.at[da + dt:d_tot, 2 * H:3 * H].set(params["wv"])
    benc = jnp.zeros((1, lane), f32)
    benc = benc.at[:, 0:H].set(params["ba"])
    benc = benc.at[:, H:2 * H].set(params["bt"])
    benc = benc.at[:, 2 * H:3 * H].set(params["bv"])

    w1 = jnp.zeros((lane, lane), f32).at[:ic, :H].set(params["w1"])
    b1 = jnp.zeros((1, lane), f32).at[:, :H].set(params["b1"])

    w2 = jnp.zeros((lane, lane), f32).at[:H, :tag].set(params["w2"])
    # padded logit columns get bias -1e30 so they contribute nothing to softmax
    b2 = jnp.full((1, lane), -1e30, f32).at[:, :tag].set(params["b2"])

    # bf16 matmul operands (halve HBM->VMEM bytes), f32 biases/accumulation
    return {"wenc": wenc.astype(bf16), "benc": benc,
            "w1": w1.astype(bf16), "b1": b1,
            "w2": w2.astype(bf16), "b2": b2,
            "tag": tag}


# ----------------------------- activation packing -----------------------------
def pack_activations(xa, xt, xv, text_len, L, rows, lane=LANE):
    """One concat + one pad + one cast (no per-modality scatters).
    Returns X (N_pad,128) bf16 and per-row valid flags (N_pad,1) int32."""
    N = xa.shape[0]
    d_tot = xa.shape[1] + xt.shape[1] + xv.shape[1]
    n_pad = _round_up(max(N, rows), rows)

    x = jnp.concatenate([xa, xt, xv], axis=1)                     # (N, d_tot)
    x = jnp.pad(x, ((0, n_pad - N), (0, lane - d_tot))).astype(jnp.bfloat16)

    pos = jnp.arange(L, dtype=jnp.int32)[None, :]                 # (1, L)
    valid = (pos < text_len[:, None]).astype(jnp.int32).reshape(N, 1)
    valid = jnp.pad(valid, ((0, n_pad - N), (0, 0)))
    return x, valid


# ------------------------------ wrapper --------------------------------------
def main_model_forward(x, valid, packed, rows):
    """x: (N_pad,128) bf16 packed activations; valid: (N_pad,1) int32.
    Returns lane-dense (N_pad,128) bf16 masked log-probs (columns tag: hold
    ~-1e30 on valid rows, padded/invalid rows are exact zeros). Consumers
    (loss / argmax) should read this buffer directly; slice [:, :tag] only if
    a narrow tensor is truly required."""
    n_pad = x.shape[0]
    assert n_pad % rows == 0 and rows % SUBLANE_BF16 == 0
    grid = (n_pad // rows,)

    rowblk = lambda r: (r, 0)      # row-block of activations / outputs
    const = lambda r: (0, 0)       # weights stay VMEM-resident across steps

    return pl.pallas_call(
        fused_forward_kernel,
        out_shape=jax.ShapeDtypeStruct((n_pad, LANE), jnp.bfloat16),
        grid_spec=pltpu.PrefetchScalarGridSpec(
            num_scalar_prefetch=0,
            grid=grid,
            in_specs=[
                pl.BlockSpec((rows, LANE), rowblk),   # X (bf16)
                pl.BlockSpec((rows, 1), rowblk),      # per-row valid flag (int32)
                pl.BlockSpec((LANE, LANE), const),    # W_enc (bf16, block-diag)
                pl.BlockSpec((1, LANE), const),       # b_enc (f32)
                pl.BlockSpec((LANE, LANE), const),    # W1
                pl.BlockSpec((1, LANE), const),       # b1
                pl.BlockSpec((LANE, LANE), const),    # W2
                pl.BlockSpec((1, LANE), const),       # b2 (-1e30 padded cols)
            ],
            out_specs=pl.BlockSpec((rows, LANE), rowblk),
        ),
        compiler_params=pltpu.CompilerParams(
            # Row blocks are independent -> split across TensorCores.
            # v7x note: switch to pltpu.CORE_PARALLEL if a profile shows one TC idle.
            dimension_semantics=("parallel",)),
    )(x, valid, packed["wenc"], packed["benc"],
      packed["w1"], packed["b1"], packed["w2"], packed["b2"])


# --------------------------- param init / demo --------------------------------
def init_params(key, a_dim, t_dim, v_dim, hidden, tag):
    ks = jax.random.split(key, 5)
    ic_dim = 3 * hidden

    def lin(k, din, dout):
        return jax.random.normal(k, (din, dout), jnp.float32) * (1.0 / jnp.sqrt(din))

    return {
        "wa": lin(ks[0], a_dim, hidden), "ba": jnp.zeros((1, hidden), jnp.float32),
        "wt": lin(ks[1], t_dim, hidden), "bt": jnp.zeros((1, hidden), jnp.float32),
        "wv": lin(ks[2], v_dim, hidden), "bv": jnp.zeros((1, hidden), jnp.float32),
        "w1": lin(ks[3], ic_dim, hidden), "b1": jnp.zeros((1, hidden), jnp.float32),
        "w2": lin(ks[4], hidden, tag),    "b2": jnp.zeros((1, tag), jnp.float32),
    }


if __name__ == "__main__":
    # Small shapes consistent with the module's forward:
    B, L = 2, 8                    # dialogues, padded dialogue length
    a_dim, t_dim, v_dim = 12, 24, 16
    hidden = 32                    # args.hidden_size
    tag = 6                        # iemocap -> 6 labels
    N = B * L

    key = jax.random.PRNGKey(0)
    k_xa, k_xt, k_xv, k_p = jax.random.split(key, 4)

    xa = jax.random.normal(k_xa, (B, L, a_dim), jnp.float32).reshape(N, a_dim)
    xt = jax.random.normal(k_xt, (B, L, t_dim), jnp.float32).reshape(N, t_dim)
    xv = jax.random.normal(k_xv, (B, L, v_dim), jnp.float32).reshape(N, v_dim)

    text_len = jnp.array([8, 5], jnp.int32)          # data['text_len_tensor']
    params = init_params(k_p, a_dim, t_dim, v_dim, hidden, tag)

    packed = pack_params(params)                     # hoisted: pack weights once
    rows = choose_rows(N)                            # 16 here; 512 on real batches
    x, valid = pack_activations(xa, xt, xv, text_len, L, rows)

    out_padded = main_model_forward(x, valid, packed, rows)
    out_padded = jax.block_until_ready(out_padded)

    # Narrow (N, tag) view only for verification; hot path keeps the padded buffer.
    out = out_padded[:N, :tag].astype(jnp.float32)

    # sanity: valid rows are log-probs (sum exp == 1), padded rows are exact zeros
    pos = jnp.arange(L)[None, :]
    valid_rows = (pos < text_len[:, None]).reshape(N)
    row_sums = jnp.sum(jnp.exp(out), axis=-1)
    assert out.shape == (N, tag)
    assert bool(jnp.all(jnp.abs(jnp.where(valid_rows, row_sums, 1.0) - 1.0) < 3e-2))
    assert bool(jnp.all(jnp.where(valid_rows, 0.0, jnp.abs(out).sum(-1)) == 0.0))

    # pure-JAX f32 reference (encoder -> concat -> classifier -> log_softmax -> mask)
    ha = jnp.maximum(xa @ params["wa"] + params["ba"], 0.0)
    ht = jnp.maximum(xt @ params["wt"] + params["bt"], 0.0)
    hv = jnp.maximum(xv @ params["wv"] + params["bv"], 0.0)
    hc = jnp.concatenate([ha, ht, hv], axis=1)
    zr = jnp.maximum(hc @ params["w1"] + params["b1"], 0.0)
    ref_logits = zr @ params["w2"] + params["b2"]
    ref = jnp.where(valid_rows[:, None], jax.nn.log_softmax(ref_logits, axis=-1), 0.0)
    assert bool(jnp.max(jnp.abs(out - ref)) < 1.5e-1)   # bf16 operands vs f32 ref

    print("KERNEL_OK")
</pallas_src>

<mosaic_0001>
module attributes {stable_mosaic.version = 11 : i64} {
  func.func @fused_forward_kernel(%arg0: i32, %arg1: memref<16x128xbf16, #tpu.memory_space<vmem>>, %arg2: memref<16x1xi32, #tpu.memory_space<vmem>>, %arg3: memref<128x128xbf16, #tpu.memory_space<vmem>>, %arg4: memref<1x128xf32, #tpu.memory_space<vmem>>, %arg5: memref<128x128xbf16, #tpu.memory_space<vmem>>, %arg6: memref<1x128xf32, #tpu.memory_space<vmem>>, %arg7: memref<128x128xbf16, #tpu.memory_space<vmem>>, %arg8: memref<1x128xf32, #tpu.memory_space<vmem>>, %arg9: memref<16x128xbf16, #tpu.memory_space<vmem>>) attributes {dimension_semantics = [#tpu.dimension_semantics<parallel>], iteration_bounds = array<i64: 1>, scalar_prefetch = 0 : i64, scratch_operands = 0 : i64, tpu.core_type = #tpu.core_type<tc>, window_params = [{transform_indices = @transform_0, window_bounds = array<i64: 16, 128>}, {transform_indices = @transform_1, window_bounds = array<i64: 16, 1>}, {pipeline_mode = #tpu.pipeline_mode<synchronous>, transform_indices = @transform_2, window_bounds = array<i64: 128, 128>}, {pipeline_mode = #tpu.pipeline_mode<synchronous>, transform_indices = @transform_3, window_bounds = array<i64: 1, 128>}, {pipeline_mode = #tpu.pipeline_mode<synchronous>, transform_indices = @transform_4, window_bounds = array<i64: 128, 128>}, {pipeline_mode = #tpu.pipeline_mode<synchronous>, transform_indices = @transform_5, window_bounds = array<i64: 1, 128>}, {pipeline_mode = #tpu.pipeline_mode<synchronous>, transform_indices = @transform_6, window_bounds = array<i64: 128, 128>}, {pipeline_mode = #tpu.pipeline_mode<synchronous>, transform_indices = @transform_7, window_bounds = array<i64: 1, 128>}, {transform_indices = @transform_8, window_bounds = array<i64: 16, 128>}]} {
    %c0 = arith.constant 0 : index
    %c0_0 = arith.constant 0 : index
    %0 = vector.load %arg1[%c0, %c0_0] : memref<16x128xbf16, #tpu.memory_space<vmem>>, vector<16x128xbf16>
    %c0_1 = arith.constant 0 : index
    %c0_2 = arith.constant 0 : index
    %1 = vector.load %arg3[%c0_1, %c0_2] : memref<128x128xbf16, #tpu.memory_space<vmem>>, vector<128x128xbf16>
    %cst = arith.constant dense<0.000000e+00> : vector<16x128xf32>
    %2 = tpu.matmul %0, %1, %cst {dimension_numbers = #tpu.dot_dimension_numbers<[1], [0], [0], [1], [0, 0, 1, 1], [], []>} : vector<16x128xbf16>, vector<128x128xbf16>, vector<16x128xf32> -> vector<16x128xf32>
    %c0_3 = arith.constant 0 : index
    %c0_4 = arith.constant 0 : index
    %3 = vector.load %arg4[%c0_3, %c0_4] : memref<1x128xf32, #tpu.memory_space<vmem>>, vector<1x128xf32>
    %4 = vector.broadcast %3 : vector<1x128xf32> to vector<16x128xf32>
    %5 = arith.addf %2, %4 : vector<16x128xf32>
    %cst_5 = arith.constant 0.000000e+00 : f32
    %6 = vector.broadcast %cst_5 : f32 to vector<16x128xf32>
    %7 = arith.maximumf %5, %6 : vector<16x128xf32>
    %8 = arith.truncf %7 : vector<16x128xf32> to vector<16x128xbf16>
    %c0_6 = arith.constant 0 : index
    %c0_7 = arith.constant 0 : index
    %9 = vector.load %arg5[%c0_6, %c0_7] : memref<128x128xbf16, #tpu.memory_space<vmem>>, vector<128x128xbf16>
    %cst_8 = arith.constant dense<0.000000e+00> : vector<16x128xf32>
    %10 = tpu.matmul %8, %9, %cst_8 {dimension_numbers = #tpu.dot_dimension_numbers<[1], [0], [0], [1], [0, 0, 1, 1], [], []>} : vector<16x128xbf16>, vector<128x128xbf16>, vector<16x128xf32> -> vector<16x128xf32>
    %c0_9 = arith.constant 0 : index
    %c0_10 = arith.constant 0 : index
    %11 = vector.load %arg6[%c0_9, %c0_10] : memref<1x128xf32, #tpu.memory_space<vmem>>, vector<1x128xf32>
    %12 = vector.broadcast %11 : vector<1x128xf32> to vector<16x128xf32>
    %13 = arith.addf %10, %12 : vector<16x128xf32>
    %cst_11 = arith.constant 0.000000e+00 : f32
    %14 = vector.broadcast %cst_11 : f32 to vector<16x128xf32>
    %15 = arith.maximumf %13, %14 : vector<16x128xf32>
    %16 = arith.truncf %15 : vector<16x128xf32> to vector<16x128xbf16>
    %c0_12 = arith.constant 0 : index
    %c0_13 = arith.constant 0 : index
    %17 = vector.load %arg7[%c0_12, %c0_13] : memref<128x128xbf16, #tpu.memory_space<vmem>>, vector<128x128xbf16>
    %cst_14 = arith.constant dense<0.000000e+00> : vector<16x128xf32>
    %18 = tpu.matmul %16, %17, %cst_14 {dimension_numbers = #tpu.dot_dimension_numbers<[1], [0], [0], [1], [0, 0, 1, 1], [], []>} : vector<16x128xbf16>, vector<128x128xbf16>, vector<16x128xf32> -> vector<16x128xf32>
    %c0_15 = arith.constant 0 : index
    %c0_16 = arith.constant 0 : index
    %19 = vector.load %arg8[%c0_15, %c0_16] : memref<1x128xf32, #tpu.memory_space<vmem>>, vector<1x128xf32>
    %20 = vector.broadcast %19 : vector<1x128xf32> to vector<16x128xf32>
    %21 = arith.addf %18, %20 : vector<16x128xf32>
    %cst_17 = arith.constant dense<0xFF800000> : vector<16xf32>
    %22 = vector.multi_reduction <maximumf>, %21, %cst_17 [1] : vector<16x128xf32> to vector<16xf32>
    %23 = vector.shape_cast %22 : vector<16xf32> to vector<16x1xf32>
    %24 = vector.broadcast %23 : vector<16x1xf32> to vector<16x128xf32>
    %25 = arith.subf %21, %24 : vector<16x128xf32>
    %26 = math.exp %25 : vector<16x128xf32>
    %cst_18 = arith.constant dense<0.000000e+00> : vector<16xf32>
    %27 = vector.multi_reduction <add>, %26, %cst_18 [1] : vector<16x128xf32> to vector<16xf32>
    %28 = vector.shape_cast %27 : vector<16xf32> to vector<16x1xf32>
    %29 = math.log %28 : vector<16x1xf32>
    %30 = arith.addf %29, %23 : vector<16x1xf32>
    %31 = vector.broadcast %30 : vector<16x1xf32> to vector<16x128xf32>
    %32 = arith.subf %21, %31 : vector<16x128xf32>
    %c0_19 = arith.constant 0 : index
    %c0_20 = arith.constant 0 : index
    %33 = vector.load %arg2[%c0_19, %c0_20] : memref<16x1xi32, #tpu.memory_space<vmem>>, vector<16x1xi32>
    %c0_i32 = arith.constant 0 : i32
    %34 = vector.broadcast %c0_i32 : i32 to vector<16x1xi32>
    %35 = arith.cmpi sgt, %33, %34 : vector<16x1xi32>
    %cst_21 = arith.constant 0.000000e+00 : f32
    %36 = vector.shape_cast %35 : vector<16x1xi1> to vector<16x1xi1>
    %37 = vector.broadcast %36 : vector<16x1xi1> to vector<16x128xi1>
    %38 = vector.broadcast %cst_21 : f32 to vector<16x128xf32>
    %39 = arith.select %37, %32, %38 : vector<16x128xi1>, vector<16x128xf32>
    %40 = arith.truncf %39 : vector<16x128xf32> to vector<16x128xbf16>
    %c0_22 = arith.constant 0 : index
    %c0_23 = arith.constant 0 : index
    %41 = vector.load %arg9[%c0_22, %c0_23] : memref<16x128xbf16, #tpu.memory_space<vmem>>, vector<16x128xbf16>
    tpu.vector_store %arg9[%c0_22, %c0_23], %40 {strides = array<i32>} : memref<16x128xbf16, #tpu.memory_space<vmem>>, vector<16x128xbf16>,
    return
  }
  func.func @transform_0(%arg0: i32) -> (i32, i32) {
    %c0_i32 = arith.constant 0 : i32
    %c0_i32_0 = arith.constant 0 : i32
    return %arg0, %c0_i32 : i32, i32
  }
  func.func @transform_1(%arg0: i32) -> (i32, i32) {
    %c0_i32 = arith.constant 0 : i32
    %c0_i32_0 = arith.constant 0 : i32
    return %arg0, %c0_i32 : i32, i32
  }
  func.func @transform_2(%arg0: i32) -> (i32, i32) {
    %c0_i32 = arith.constant 0 : i32
    %c0_i32_0 = arith.constant 0 : i32
    %c0_i32_1 = arith.constant 0 : i32
    return %c0_i32, %c0_i32_0 : i32, i32
  }
  func.func @transform_3(%arg0: i32) -> (i32, i32) {
    %c0_i32 = arith.constant 0 : i32
    %c0_i32_0 = arith.constant 0 : i32
    %c0_i32_1 = arith.constant 0 : i32
    return %c0_i32, %c0_i32_0 : i32, i32
  }
  func.func @transform_4(%arg0: i32) -> (i32, i32) {
    %c0_i32 = arith.constant 0 : i32
    %c0_i32_0 = arith.constant 0 : i32
    %c0_i32_1 = arith.constant 0 : i32
    return %c0_i32, %c0_i32_0 : i32, i32
  }
  func.func @transform_5(%arg0: i32) -> (i32, i32) {
    %c0_i32 = arith.constant 0 : i32
    %c0_i32_0 = arith.constant 0 : i32
    %c0_i32_1 = arith.constant 0 : i32
    return %c0_i32, %c0_i32_0 : i32, i32
  }
  func.func @transform_6(%arg0: i32) -> (i32, i32) {
    %c0_i32 = arith.constant 0 : i32
    %c0_i32_0 = arith.constant 0 : i32
    %c0_i32_1 = arith.constant 0 : i32
    return %c0_i32, %c0_i32_0 : i32, i32
  }
  func.func @transform_7(%arg0: i32) -> (i32, i32) {
    %c0_i32 = arith.constant 0 : i32
    %c0_i32_0 = arith.constant 0 : i32
    %c0_i32_1 = arith.constant 0 : i32
    return %c0_i32, %c0_i32_0 : i32, i32
  }
  func.func @transform_8(%arg0: i32) -> (i32, i32) {
    %c0_i32 = arith.constant 0 : i32
    %c0_i32_0 = arith.constant 0 : i32
    return %arg0, %c0_i32 : i32, i32
  }
}

</mosaic_0001>

<bundles_post_ra>
// kernel: tpu_custom_call.1
= control target key start
LH: loop header
LB: loop body
LE: loop exit
PB: predicated region body
PF: predicated region fallthrough
CT: control target
= control target key end

     0   :  { %13 = vsyncpa [#allocation3], 0  ;;  %s745_s0 = inlined_call_operand.vmem [shape: bf16[16,128], index: 0, kind: input, shape index: {}]   ;;  %s746_s1 = inlined_call_operand.vmem [shape: s32[16,1], index: 1, kind: input, shape index: {}]   ;;  %s747_s2 = inlined_call_operand.hbm [shape: bf16[128,128], index: 2, kind: input, shape index: {}]   ;;  %s748_s3 = inlined_call_operand.vmem [shape: f32[1,128], index: 3, kind: input, shape index: {}]   ;;  %s749_s4 = inlined_call_operand.hbm [shape: bf16[128,128], index: 4, kind: input, shape index: {}]   ;;  %s750_s5 = inlined_call_operand.vmem [shape: f32[1,128], index: 5, kind: input, shape index: {}]   ;;  %s751_s6 = inlined_call_operand.hbm [shape: bf16[128,128], index: 6, kind: input, shape index: {}]   ;;  %s752_s7 = inlined_call_operand.vmem [shape: f32[1,128], index: 7, kind: input, shape index: {}]   ;;  %s753_s8 = inlined_call_operand.hbm [shape: bf16[16,128], index: 8, kind: output, shape index: {}]  }
   0x1   :  { %14 = vsyncpa [#allocation6], 0 }
   0x2   :  { %15 = vsyncpa [#allocation4], 0  ;;  %s39_s29 = sshll.u32 %s749_s4, 4  ;;  %s651_s30 = smov [#allocation5]   ;;  %s40_s29 = int_to_ptr.hbm [resolvable:$true] %s39_s29 }
   0x3   :  { %s41_s9 = sshll.u32 %s651_s30, 4  ;;  %s24_s12 = sshll.u32 %s747_s2, 4  ;;  %s42_s9 = int_to_ptr.vmem [resolvable:$true] %s41_s9  ;;  %s25_s12 = int_to_ptr.hbm [resolvable:$true] %s24_s12 }
   0x4   :  { %s652_s13 = smov 64   ;;  %s653_s14 = smov 4  }
   0x5   :  { %47 = dma.hbm_to_vmem [thread:$0]  %s40_s29, 1024, %s42_s9, [#allocation6], %s652_s13, %s652_s13, %s653_s14  }
   0x6   :  { %s654_s15 = smov [#allocation2]   ;;  %s54_s4 = sshll.u32 %s751_s6, 4  ;;  %s55_s4 = int_to_ptr.hbm [resolvable:$true] %s54_s4 }
   0x7   :  { %s26_s16 = sshll.u32 %s654_s15, 4  ;;  %s655_s2 = smov [#allocation7]   ;;  %s27_s16 = int_to_ptr.vmem [resolvable:$true] %s26_s16 }
   0x8   :  { %32 = dma.hbm_to_vmem [thread:$0]  %s25_s12, 1024, %s27_s16, [#allocation3], %s652_s13, %s652_s13, %s653_s14  }
   0x9   :  { %s56_s19 = sshll.u32 %s655_s2, 4  ;;  %s57_s19 = int_to_ptr.vmem [resolvable:$true] %s56_s19 }
   0xa   :  { %62 = dma.hbm_to_vmem [thread:$0]  %s55_s4, 1024, %s57_s19, [#allocation6], %s652_s13, %s652_s13, %s653_s14  }
   0xb   :  { %645 = dma.done.wait [#allocation3], 1024  }
   0xc   :  { %646 = vsyncadd [#allocation3], 4294966272 }
   0xd   :  { %647 = dma.done.wait [#allocation6], 2048  }
   0xe   :  { %648 = vsyncadd [#allocation6], 4294965248  ;;  %v507_v0 = vld [vmem:[#allocation2 + $0x38] sm:$0xff]  ;;  %v506_v1 = vld [vmem:[#allocation2 + $0x30] sm:$0xff]  ;;  %v656_v47 = vmov 0   ;;  %s385_s30 = sshll.u32 %s753_s8, 4  ;;  %s386_s30 = int_to_ptr.hbm [resolvable:$true] %s385_s30 }
   0xf   :  { %153 = vmatpush.bf16.msra.mxu0 %v507_v0  ;;  %v515_v2 = vld [vmem:[#allocation5 + $0x38] sm:$0xff]  ;;  %v514_v3 = vld [vmem:[#allocation5 + $0x30] sm:$0xff]  ;;  %v505_v4 = vld [vmem:[#allocation2 + $0x28] sm:$0xff]  ;;  %536 = vset.pattern.permute.xlu2 %v656_v47 }
  0x10   :  { %238 = vmatpush.bf16.msra.mxu1 %v515_v2  ;;  %v513_v5 = vld [vmem:[#allocation5 + $0x28] sm:$0xff]  ;;  %v504_v6 = vld [vmem:[#allocation2 + $0x20] sm:$0xff]  ;;  %v503_v8 = vld [vmem:[#allocation2 + $0x18] sm:$0xff]  ;;  %537 = vset.pattern.permute.xlu0 %v656_v47 }
  0x11   :  { %v512_v7 = vld [vmem:[#allocation5 + $0x20] sm:$0xff]  ;;  %v502_v9 = vld [vmem:[#allocation2 + $0x10] sm:$0xff]  ;;  %v501_v10 = vld [vmem:[#allocation2 + $0x8] sm:$0xff] }
  0x12   :  { %v500_v11 = vld [vmem:[#allocation2] sm:$0xff]  ;;  %v511_v13 = vld [vmem:[#allocation5 + $0x18] sm:$0xff]  ;;  %v510_v14 = vld [vmem:[#allocation5 + $0x10] sm:$0xff] }
  0x13   :  { %154 = vmatpush.bf16.msra.mxu0 %v506_v1  ;;  %v499_v12 = vld [vmem:[%s745_s0] sm:$0xff]  ;;  %v509_v15 = vld [vmem:[#allocation5 + $0x8] sm:$0xff]  ;;  %v523_v17 = vld [vmem:[#allocation7 + $0x38] sm:$0xff] }
  0x14   :  { %239 = vmatpush.bf16.msra.mxu1 %v514_v3  ;;  %v508_v16 = vld [vmem:[#allocation5] sm:$0xff]  ;;  %323 = vmatpush.bf16.msra.mxu2 %v523_v17  ;;  %v522_v18 = vld [vmem:[#allocation7 + $0x30] sm:$0xff]  ;;  %v521_v19 = vld [vmem:[#allocation7 + $0x28] sm:$0xff] }
  0x15   :  { %v520_v20 = vld [vmem:[#allocation7 + $0x20] sm:$0xff]  ;;  %v519_v29 = vld [vmem:[#allocation7 + $0x18] sm:$0xff]  ;;  %v518_v30 = vld [vmem:[#allocation7 + $0x10] sm:$0xff] }
  0x16   :  { %v538_v22 = vld [vmem:[%s748_s3] ss:$0 sm:$0xff]  ;;  %v517_v31 = vld [vmem:[#allocation7 + $0x8] sm:$0xff] }
  0x17   :  { %155 = vmatpush.bf16.msra.mxu0 %v505_v4  ;;  %v516_v32 = vld [vmem:[#allocation7] sm:$0xff]  ;;  %v360_v49 = vld [vmem:[%s746_s1 + $0x8] sm:$0xff] }
  0x18   :  { %240 = vmatpush.bf16.msra.mxu1 %v513_v5  ;;  %324 = vmatpush.bf16.msra.mxu2 %v522_v18  ;;  %v539_v34 = vld [vmem:[%s750_s5] ss:$0 sm:$0xff]  ;;  %vm362_vm1 = vcmp.gt.s32.totalorder %v360_v49, 0 }
  0x19   :  { %v540_v41 = vld [vmem:[%s752_s7] ss:$0 sm:$0xff]  ;;  %v364_v50 = vsel %vm362_vm1, 1, %v656_v47 }
  0x1a   :  { %v359_v46 = vld [vmem:[%s746_s1] sm:$0xff]  ;;  %s657_s1 = smov [#allocation8]  }
  0x1b   :  { %156 = vmatpush.bf16.msra.mxu0 %v504_v6  ;;  %vm361_vm0 = vcmp.gt.s32.totalorder %v359_v46, 0  ;;  %s383_s7 = sshll.u32 %s657_s1, 4  ;;  %s384_s7 = int_to_ptr.vmem [resolvable:$true] %s383_s7 }
  0x1c   :  { %241 = vmatpush.bf16.msra.mxu1 %v512_v7  ;;  %325 = vmatpush.bf16.msra.mxu2 %v521_v19  ;;  %v363_v48 = vsel %vm361_vm0, 1, %v656_v47 }
  0x1d   :  { %366 = vperm.xlu2 %536, %v363_v48  }
  0x1f   :  { %157 = vmatpush.bf16.msra.mxu0 %v503_v8 }
  0x20   :  { %242 = vmatpush.bf16.msra.mxu1 %v511_v13  ;;  %326 = vmatpush.bf16.msra.mxu2 %v520_v20 }
  0x23   :  { %158 = vmatpush.bf16.msra.mxu0 %v502_v9 }
  0x24   :  { %243 = vmatpush.bf16.msra.mxu1 %v510_v14  ;;  %327 = vmatpush.bf16.msra.mxu2 %v519_v29 }
  0x25   :  { %369 = vperm.xlu2 %536, %v364_v50  }
  0x27   :  { %159 = vmatpush.bf16.msra.mxu0 %v501_v10 }
  0x28   :  { %244 = vmatpush.bf16.msra.mxu1 %v509_v15  ;;  %328 = vmatpush.bf16.msra.mxu2 %v518_v30 }
  0x2b   :  { %160 = vmatpush.bf16.msra.mxu0 %v500_v11 }
  0x2c   :  { %245 = vmatpush.bf16.msra.mxu1 %v508_v16  ;;  %329 = vmatpush.bf16.msra.mxu2 %v517_v31 }
  0x2e   :  { %161 = vmatmul.bf16.vlgmr.msra.gmra.mxu0 %v499_v12 }
  0x30   :  { %330 = vmatpush.bf16.msra.mxu2 %v516_v32 }
  0x77   :  { %v367_v61 = vpop.permute.xlu2 %366 }
  0x78   :  { %vm371_vm2 = vcmp.eq.s32.totalorder %v367_v61, 1 }
  0x7f   :  { %v370_v5 = vpop.permute.xlu2 %369 }
  0x80   :  { %vm372_vm3 = vcmp.eq.s32.totalorder %v370_v5, 1 }
  0xab   :  { %v162_v21 = vpop.f32.mrf.mxu0 }
  0xac   :  { %v163_v23 = vadd.f32 %v538_v22, %v162_v21 }
  0xae   :  { %v167_v26 = vmax.f32 %v163_v23, 0.0 }
  0xb3   :  { %v164_v24 = vpop.f32.mrf.mxu0 }
  0xb4   :  { %v165_v25 = vadd.f32 %v538_v22, %v164_v24 }
  0xb6   :  { %v168_v27 = vmax.f32 %v165_v25, 0.0 }
  0xb8   :  { %v169_v28 = vpack.c.bf16 %v168_v27, %v167_v26 }
  0xba   :  { %246 = vmatmul.bf16.vlgmr.msra.gmra.mxu1 %v169_v28 }
 0x137   :  { %v247_v33 = vpop.f32.mrf.mxu1 }
 0x138   :  { %v248_v35 = vadd.f32 %v539_v34, %v247_v33 }
 0x13a   :  { %v252_v38 = vmax.f32 %v248_v35, 0.0 }
 0x13f   :  { %v249_v36 = vpop.f32.mrf.mxu1 }
 0x140   :  { %v250_v37 = vadd.f32 %v539_v34, %v249_v36 }
 0x142   :  { %v253_v39 = vmax.f32 %v250_v37, 0.0 }
 0x144   :  { %v254_v40 = vpack.c.bf16 %v253_v39, %v252_v38 }
 0x146   :  { %331 = vmatmul.bf16.vlgmr.msra.gmra.mxu2 %v254_v40 }
 0x1c9   :  { %v332_v42 = vpop.f32.mrf.mxu2 }
 0x1ca   :  { %v333_v43 = vadd.f32 %v540_v41, %v332_v42 }
 0x1cc   :  { %337 = vmax.xlane.f32.xlu0 %v333_v43 }
 0x1d1   :  { %v334_v44 = vpop.f32.mrf.mxu2 }
 0x1d2   :  { %v335_v45 = vadd.f32 %v540_v41, %v334_v44 }
 0x1d4   :  { %339 = vmax.xlane.f32.xlu0 %v335_v45 }
 0x23f   :  { %v338_v51 = vpop.xlane.xlu0 %337 }
 0x240   :  { %v341_v52 = vsub.f32 %v333_v43, %v338_v51 }
 0x242   :  { %v343_v53 = vmul.f32 1.442695, %v341_v52 }
 0x244   :  { %541 = vpow2.f32 %v343_v53 }
 0x247   :  { %v340_v54 = vpop.xlane.xlu0 %339 }
 0x248   :  { %v342_v55 = vsub.f32 %v335_v45, %v340_v54 }
 0x24a   :  { %v542_v56 = vpop.eup %541  ;;  %v345_v57 = vmul.f32 1.442695, %v342_v55 }
 0x24b   :  { %347 = vadd.xlane.f32.xlu1 %v542_v56 }
 0x24c   :  { %543 = vpow2.f32 %v345_v57 }
 0x252   :  { %v544_v58 = vpop.eup %543 }
 0x253   :  { %349 = vadd.xlane.f32.xlu1 %v544_v58 }
 0x2be   :  { %v348_v59 = vpop.xlane.xlu1 %347 }
 0x2bf   :  { %545 = vlog2.f32 %v348_v59 }
 0x2c5   :  { %v546_v60 = vpop.eup %545 }
 0x2c6   :  { %v350_v62 = vpop.xlane.xlu1 %349  ;;  %v352_v63 = vmul.f32 0.6931472, %v546_v60 }
 0x2c7   :  { %547 = vlog2.f32 %v350_v62 }
 0x2c8   :  { %v355_v0 = vadd.f32 %v352_v63, %v338_v51 }
 0x2ca   :  { %v357_v3 = vsub.f32 %v333_v43, %v355_v0 }
 0x2cc   :  { %v373_v7 = vsel %vm371_vm2, %v357_v3, 0.0 }
 0x2cd   :  { %v548_v1 = vpop.eup %547 }
 0x2ce   :  { %v354_v2 = vmul.f32 0.6931472, %v548_v1 }
 0x2d0   :  { %v356_v4 = vadd.f32 %v354_v2, %v340_v54 }
 0x2d2   :  { %v358_v6 = vsub.f32 %v335_v45, %v356_v4 }
 0x2d4   :  { %v374_v8 = vsel %vm372_vm3, %v358_v6, 0.0 }
 0x2d5   :  { %v527_v9 = vpack.c.bf16 %v374_v8, %v373_v7 }
 0x2d7   :  { %528 = vst [vmem:[#allocation8] sm:$0xff] %v527_v9  }
 0x2d8   :  { %391 = dma.vmem_to_hbm [thread:$0]  %s384_s7, 128, %s386_s30, [#allocation4], %s652_s13, %s652_s13, %s653_s14  }
 0x2d9   :  { %649 = dma.done.wait [#allocation4], 128  }
 0x2da   :  { %650 = vsyncadd [#allocation4], 4294967168 }
 0x2db   :  { %396 = vsyncpa [#allocation3], 1 }
 0x2dc   :  { %397 = vsyncpa [#allocation6], 1 }
 0x2dd   :  { %398 = vsyncpa [#allocation4], 1 }

</bundles_post_ra>
